<compile_context>
chip_gen: v6e
topology: v6e:2x2x1
jax: 0.10.0
libtpu: 0.0.40
codegen_flags: <defaults>
</compile_context>

<pallas_src>
import jax
import jax.numpy as jnp
from jax import lax
from jax.experimental import pallas as pl
from jax.experimental.pallas import tpu as pltpu


_TK_MAX = 2048   # max K tile (f32 weight tile 512*2048*4B = 4 MiB, x2 buffers)
_TN_MAX = 512    # max N (out_dim) tile
_TM_MAX = 256    # max M (batch) tile


def _round_up(a: int, b: int) -> int:
    return ((a + b - 1) // b) * b


def _matmul_kernel_accout(x_ref, w_ref, o_ref):
    """o[i,j] (+)= sum_k x[i,k] * w[j,k].  o_ref is resident across the K axis
    (its block index ignores k), so it doubles as the f32 accumulator."""
    @pl.when(pl.program_id(2) == 0)
    def _():
        o_ref[...] = jnp.zeros_like(o_ref)

    o_ref[...] += lax.dot_general(
        x_ref[...], w_ref[...],
        dimension_numbers=(((1,), (1,)), ((), ())),   # x @ W^T, W in native layout
        preferred_element_type=jnp.float32,
    )


def _matmul_kernel_scratch(x_ref, w_ref, o_ref, acc_ref):
    """Same contraction, but with an f32 VMEM accumulator for narrow outputs."""
    @pl.when(pl.program_id(2) == 0)
    def _():
        acc_ref[...] = jnp.zeros_like(acc_ref)

    acc_ref[...] += lax.dot_general(
        x_ref[...], w_ref[...],
        dimension_numbers=(((1,), (1,)), ((), ())),
        preferred_element_type=jnp.float32,
    )

    @pl.when(pl.program_id(2) == pl.num_programs(2) - 1)
    def _():
        o_ref[...] = acc_ref[...].astype(o_ref.dtype)


def _choose_m_tile(M: int):
    if M <= _TM_MAX:
        return M, M                       # full-dim block (legal for any M)
    return _TM_MAX, _round_up(M, _TM_MAX)


def _choose_k_tile(K: int):
    if K <= _TK_MAX:
        return K, K                       # single K block, no padding, any alignment
    Kp = _round_up(K, 128)
    tk = 128
    for cand in range(256, _TK_MAX + 1, 128):
        if Kp % cand == 0:
            tk = cand                     # largest 128-multiple tile dividing Kp
    return tk, _round_up(Kp, tk)


def _choose_n_tile(N: int):
    """Avoid padding W whenever possible; prefer >= 2 blocks along N so both
    v7x TensorCores ('parallel' axis) stream half of the weight each."""
    if N % 128 == 0:
        m = N // 128
        max_d = _TN_MAX // 128
        cands = [d for d in range(1, max_d + 1) if m % d == 0]
        two = [d for d in cands if m // d >= 2]
        d = max(two) if two else max(cands)
        return 128 * d, N
    if N <= 1024:
        return N, N                       # full-dim block, no pad
    return _TN_MAX, _round_up(N, _TN_MAX)  # rare: huge & misaligned -> pad


@jax.jit
def linear_forward(w: jax.Array, x: jax.Array) -> jax.Array:
    """Computes w @ x (PyTorch `parameter @ state_tensor`) with a Pallas kernel."""
    squeeze = x.ndim == 1
    if squeeze:
        x = x[:, None]                    # matrix-vector -> width-1 batch

    out_dim, in_dim = w.shape
    assert x.shape[0] == in_dim, (x.shape, w.shape)
    batch = x.shape[1]
    out_dtype = jnp.result_type(w.dtype, x.dtype)   # match `@` promotion

    M, K, N = batch, in_dim, out_dim
    tm, Mp = _choose_m_tile(M)
    tk, Kp = _choose_k_tile(K)
    tn, Np = _choose_n_tile(N)

    # Lane-dense activation slab (batch, in_dim).  x is tiny, so this transpose
    # (and any padding of it) is negligible; the big operand W is fed untouched.
    xt = x.T
    if (Mp, Kp) != xt.shape:
        xt = jnp.pad(xt, ((0, Mp - M), (0, Kp - K)))

    w_in = w
    if (Np, Kp) != w.shape:
        # Rare path only (misaligned K > 2048 or misaligned N > 1024).
        # Zero K-padding is exact; padded N rows are sliced off below.
        w_in = jnp.pad(w, ((0, Np - N), (0, Kp - K)))

    gm, gn, gk = Mp // tm, Np // tn, Kp // tk

    acc_in_out = jnp.dtype(out_dtype) == jnp.dtype(jnp.float32)
    kernel = _matmul_kernel_accout if acc_in_out else _matmul_kernel_scratch
    scratch = [] if acc_in_out else [pltpu.VMEM((tm, tn), jnp.float32)]

    bytes_accessed = (
        gn * Mp * Kp * xt.dtype.itemsize          # x re-read once per N block
        + gm * Np * Kp * w_in.dtype.itemsize      # W re-read once per M block (gm==1 typ.)
        + Mp * Np * jnp.dtype(out_dtype).itemsize
    )
    cost = pl.CostEstimate(
        flops=2 * M * N * K, transcendentals=0, bytes_accessed=bytes_accessed
    )

    out = pl.pallas_call(
        kernel,
        out_shape=jax.ShapeDtypeStruct((Mp, Np), out_dtype),
        grid_spec=pltpu.PrefetchScalarGridSpec(
            num_scalar_prefetch=0,
            grid=(gm, gn, gk),
            in_specs=[
                pl.BlockSpec((tm, tk), lambda i, j, k: (i, k)),   # x^T slab
                pl.BlockSpec((tn, tk), lambda i, j, k: (j, k)),   # W, native layout
            ],
            out_specs=pl.BlockSpec((tm, tn), lambda i, j, k: (i, j)),
            scratch_shapes=scratch,
        ),
        compiler_params=pltpu.CompilerParams(
            dimension_semantics=("parallel", "parallel", "arbitrary"),
            vmem_limit_bytes=48 * 1024 * 1024,    # safe on v5e/v6e/v7x (64 MiB phys.)
        ),
        cost_estimate=cost,
    )(xt, w_in)

    out = out[:M, :N]   # strip padding -> (batch, out_dim), lane-dense slab
    out = out.T         # back to PyTorch layout (out_dim, batch)
    if squeeze:
        out = out[:, 0]
    return out


if __name__ == "__main__":
    # K spans one full-dim block, N = 256 gives two 128-wide N blocks
    # (both v7x TensorCores), batch = 16.
    input_dim, output_dim, batch = 1024, 256, 16

    key = jax.random.PRNGKey(0)
    kw, kx, kv = jax.random.split(key, 3)

    # Module __init__ uses zeros(output_dim, input_dim); use a deterministic
    # random parameter of the same shape so the output is non-trivial.
    w = jax.random.normal(kw, (output_dim, input_dim), dtype=jnp.float32)
    x = jax.random.normal(kx, (input_dim, batch), dtype=jnp.float32)

    out = jax.block_until_ready(linear_forward(w, x))
    ref = w @ x
    assert out.shape == (output_dim, batch), out.shape
    assert jnp.allclose(out, ref, atol=1e-4, rtol=1e-4)

    # 1-D (vector) path, matching PyTorch `@` matrix-vector semantics.
    xvec = jax.random.normal(kv, (input_dim,), dtype=jnp.float32)
    outv = jax.block_until_ready(linear_forward(w, xvec))
    assert outv.shape == (output_dim,), outv.shape
    assert jnp.allclose(outv, w @ xvec, atol=1e-4, rtol=1e-4)

    # Non-aligned shapes (full-dim blocks, no padding of W).
    w2 = jax.random.normal(kw, (48, 200), dtype=jnp.float32)
    x2 = jax.random.normal(kx, (200, 5), dtype=jnp.float32)
    out2 = jax.block_until_ready(linear_forward(w2, x2))
    assert out2.shape == (48, 5)
    assert jnp.allclose(out2, w2 @ x2, atol=1e-4, rtol=1e-4)

    print("KERNEL_OK")
</pallas_src>

<mosaic_0001>
module attributes {stable_mosaic.version = 11 : i64} {
  func.func @_matmul_kernel_accout(%arg0: i32, %arg1: i32, %arg2: i32, %arg3: memref<16x1024xf32, #tpu.memory_space<vmem>>, %arg4: memref<128x1024xf32, #tpu.memory_space<vmem>>, %arg5: memref<16x128xf32, #tpu.memory_space<vmem>>) attributes {dimension_semantics = [#tpu.dimension_semantics<parallel>, #tpu.dimension_semantics<parallel>, #tpu.dimension_semantics<arbitrary>], iteration_bounds = array<i64: 1, 2, 1>, scalar_prefetch = 0 : i64, scratch_operands = 0 : i64, tpu.core_type = #tpu.core_type<tc>, window_params = [{transform_indices = @transform_0, window_bounds = array<i64: 16, 1024>}, {transform_indices = @transform_1, window_bounds = array<i64: 128, 1024>}, {transform_indices = @transform_2, window_bounds = array<i64: 16, 128>}]} {
    %c0_i32 = arith.constant 0 : i32
    %0 = arith.cmpi eq, %arg2, %c0_i32 : i32
    %1 = arith.extui %0 : i1 to i32
    %c0_i32_0 = arith.constant 0 : i32
    %2 = arith.cmpi ne, %1, %c0_i32_0 : i32
    scf.if %2 {
      %cst_8 = arith.constant 0.000000e+00 : f32
      %9 = vector.broadcast %cst_8 : f32 to vector<16x128xf32>
      %c0_9 = arith.constant 0 : index
      %c0_10 = arith.constant 0 : index
      %10 = vector.load %arg5[%c0_9, %c0_10] : memref<16x128xf32, #tpu.memory_space<vmem>>, vector<16x128xf32>
      tpu.vector_store %arg5[%c0_9, %c0_10], %9 {strides = array<i32>} : memref<16x128xf32, #tpu.memory_space<vmem>>, vector<16x128xf32>,
    } else {
    }
    %c0 = arith.constant 0 : index
    %c0_1 = arith.constant 0 : index
    %3 = vector.load %arg5[%c0, %c0_1] : memref<16x128xf32, #tpu.memory_space<vmem>>, vector<16x128xf32>
    %c0_2 = arith.constant 0 : index
    %c0_3 = arith.constant 0 : index
    %4 = vector.load %arg3[%c0_2, %c0_3] : memref<16x1024xf32, #tpu.memory_space<vmem>>, vector<16x1024xf32>
    %c0_4 = arith.constant 0 : index
    %c0_5 = arith.constant 0 : index
    %5 = vector.load %arg4[%c0_4, %c0_5] : memref<128x1024xf32, #tpu.memory_space<vmem>>, vector<128x1024xf32>
    %cst = arith.constant dense<0.000000e+00> : vector<16x128xf32>
    %6 = tpu.matmul %4, %5, %cst {dimension_numbers = #tpu.dot_dimension_numbers<[1], [1], [0], [0], [0, 0, 1, 0], [], []>} : vector<16x1024xf32>, vector<128x1024xf32>, vector<16x128xf32> -> vector<16x128xf32>
    %7 = arith.addf %3, %6 : vector<16x128xf32>
    %c0_6 = arith.constant 0 : index
    %c0_7 = arith.constant 0 : index
    %8 = vector.load %arg5[%c0_6, %c0_7] : memref<16x128xf32, #tpu.memory_space<vmem>>, vector<16x128xf32>
    tpu.vector_store %arg5[%c0_6, %c0_7], %7 {strides = array<i32>} : memref<16x128xf32, #tpu.memory_space<vmem>>, vector<16x128xf32>,
    return
  }
  func.func @transform_0(%arg0: i32, %arg1: i32, %arg2: i32) -> (i32, i32) {
    %c0_i32 = arith.constant 0 : i32
    return %arg0, %arg2 : i32, i32
  }
  func.func @transform_1(%arg0: i32, %arg1: i32, %arg2: i32) -> (i32, i32) {
    %c0_i32 = arith.constant 0 : i32
    return %arg1, %arg2 : i32, i32
  }
  func.func @transform_2(%arg0: i32, %arg1: i32, %arg2: i32) -> (i32, i32) {
    %c0_i32 = arith.constant 0 : i32
    return %arg0, %arg1 : i32, i32
  }
}

</mosaic_0001>

<bundles_post_ra>
// kernel: linear_forward.1
= control target key start
LH: loop header
LB: loop body
LE: loop exit
PB: predicated region body
PF: predicated region fallthrough
CT: control target
= control target key end

     0   :  { %7 = vsyncpa [#allocation3], 0  ;;  %s1378_s0 = inlined_call_operand.hbm [shape: f32[16,1024], index: 0, kind: input, shape index: {}]   ;;  %s1379_s1 = inlined_call_operand.hbm [shape: f32[256,1024], index: 1, kind: input, shape index: {}]   ;;  %s1380_s2 = inlined_call_operand.hbm [shape: f32[16,256], index: 2, kind: output, shape index: {}]  }
   0x1   :  { %8 = vsyncpa [#allocation6], 0 }
   0x2   :  { %10 = vsyncpa [#allocation6 + $0x1], 0 }
   0x3   :  { %11 = vsyncpa [#allocation4], 0 }
   0x4   :  { %13 = vsyncpa [#allocation4 + $0x1], 0  ;;  %s1060_s9 = smov 0   ;;  %s1062_s10 = smov 0  }
   0x5   :  { %s1064_s11 = smov 0   ;;  %s1066_s12 = smov 0  }
   0x6   :  { %s1068_s13 = smov 0   ;;  %s1070_s14 = smov 0  }
   0x7 LB: > { %s799_s15 = sadd.s32 4294967295, %s1035_s14   ;;  %s800_s16 = sadd.s32 4294967294, %s1035_s14   ;;  %s1035_s14 = sphi %s1070_s14, %s19_s14   ;;  %s1031_s13 = sphi %s1068_s13, %s1400_s13   ;;  %s1027_s12 = sphi %s1066_s12, %s1399_s12   ;;  %s1023_s11 = sphi %s1064_s11, %s1398_s11   ;;  %s1019_s10 = sphi %s1062_s10, %s1397_s10   ;;  %s1015_s9 = sphi %s1060_s9, %s1396_s9  }
   0x8   : > { %p88_p0 = scmp.ne.s32.totalorder %s1019_s10, %s1015_s9  ;;  %p1094_p1 = scmp.eq.s32.totalorder %s799_s15, 0 }
   0x9   : > { %p1098_p2 = scmp.eq.s32.totalorder %s799_s15, 1  ;;  %p120_p3 = scmp.eq.s32.totalorder %s800_s16, 1 }
   0xa   : > { %p1104_p4 = por %p1094_p1, %p88_p0  ;;  %p801_p5 = scmp.ge.s32.totalorder %s1035_s14, 1 }
   0xb   : > { %p1109_p6 = por %p120_p3, %p88_p0  ;;  %p127_p7 = scmp.lt.s32.totalorder %s1035_s14, 3 }
   0xc   : > { %s1385_s19 = scalar_select %p1104_p4, 1, 0 }
   0xd   : > { %s1386_s20 = scalar_select %p1109_p6, 1, 0 }
   0xe   : > { %p1114_p8 = pnand %p801_p5, %p127_p7  ;;  %s1037_s22 = smov [#allocation2]  }
   0xf   : > { %s145_s23 = sshll.u32 %s1037_s22, 4  ;;  %s34_s25 = sadd.s32 1, %s1031_s13  ;;  %s146_s23 = int_to_ptr.vmem [resolvable:$true] %s145_s23 }
  0x10   : > { %p826_p9 = pneg %p1114_p8  ;;  %s908_s26 = scalar_lea.vmem %s146_s23, 2048 }
  0x11   : > { %p909_p13 = scmp.ne.s32.totalorder %s146_s23, %s908_s26  ;;  %p916_p5 = scmp.lt.s32.totalorder %s146_s23, %s146_s23 }
  0x12   : > { %p1123_p11 = pnand %p826_p9, %p1094_p1  ;;  %p917_p7 = scmp.lt.s32.totalorder %s908_s26, %s908_s26 }
  0x14   : > { %p899_p12 = pneg %p1123_p11  ;;  %p918_p6 = por %p917_p7, %p916_p5 }
  0x16   : > { %p911_p0 = pnand %p909_p13, %p899_p12 }
  0x18   : > { %p912_p3 = pneg %p911_p0 }
  0x1a   : > { %p919_p4 = pnand %p918_p6, %p912_p3 }
  0x1c   : > { %922 = shalt.err (!%p919_p4)
}
  0x1d   : > { %s1382_s27 = smov 1024   ;;  %s1039_s28 = smov 64  }
  0x1e   : > { %829 = dma.hbm_to_vmem [thread:$0]  (!%p1123_p11), %s1378_s0, 2048, %s146_s23, [#allocation3], %s1382_s27, %s1382_s27, %s1039_s28  }
  0x1f   : > { %p36_p4 = scmp.ge.s32.totalorder %s34_s25, 2  ;;  %s75_s3 = sadd.s32 1, %s1023_s11 }
  0x20   : > { %p82_p6 = scmp.ne.s32.totalorder %s1023_s11, %s1019_s10  ;;  %p83_p9 = scmp.eq.s32.totalorder %s1035_s14, 0 }
  0x21   : > { %s1402_s25 = smov (%p36_p4, %s34_s25), 0  ;;  %p839_p0 = scmp.lt.s32.totalorder %s1035_s14, 2 }
  0x22   : > { %p1144_p12 = por %p83_p9, %p82_p6  ;;  %p1150_p13 = por %p1098_p2, %p82_p6 }
  0x23   : > { %s70_s6 = ssub.s32 %s1031_s13, %s1402_s25  ;;  %s159_s7 = sand.u32 1, %s1023_s11  }
  0x24   : > { %p73_p11 = scmp.eq.s32.totalorder %s70_s6, 0  ;;  %s804_s8 = sshll.u32 %s159_s7, 10 }
  0x25   : > { %s817_s16 = sshll.u32 %s1031_s13, 14  ;;  %s163_s26 = scalar_lea.vmem [#allocation5], %s804_s8 }
  0x26   : > { %s1159_s15 = scalar_select %p73_p11, %s1023_s11, %s75_s3  }
  0x27   : > { %s172_s24 = scalar_lea.hbm %s1379_s1, %s817_s16  ;;  %s173_s29 = sshll.u32 %s163_s26, 4  ;;  %s174_s29 = int_to_ptr.vmem [resolvable:$true] %s173_s29 }
  0x28   : > { %p1167_p2 = pnand %p839_p0, %p1144_p12  ;;  %s160_s30 = scalar_lea.sflag [#allocation6], %s159_s7 }
  0x29   : > { %s936_s6 = scalar_lea.vmem %s174_s29, 16384  ;;  %s1040_s3 = smov [#allocation5]  }
  0x2a   : > { %p925_p3 = pneg %p1167_p2  ;;  %p937_p5 = scmp.ne.s32.totalorder %s174_s29, %s936_s6 }
  0x2b   : > { %s941_s27 = sshll.u32 %s1040_s3, 4  ;;  %s942_s27 = int_to_ptr.vmem [resolvable:$false] %s941_s27 }
  0x2c   : > { %p939_p7 = pnand %p937_p5, %p925_p3  ;;  %s943_s16 = scalar_lea.vmem %s942_s27, 32768 }
  0x2d   : > { %p944_p6 = scmp.lt.s32.totalorder %s174_s29, %s942_s27  ;;  %p945_p9 = scmp.lt.s32.totalorder %s943_s16, %s936_s6 }
  0x2e   : > { %p940_p4 = pneg %p939_p7 }
  0x2f   : > { %p946_p11 = por %p945_p9, %p944_p6 }
  0x31   : > { %p947_p10 = pnand %p946_p11, %p940_p4 }
  0x33   : > { %950 = shalt.err (!%p947_p10)
}
  0x34   : > { %s1392_s4 = smov 1024   ;;  %185 = sbr.rel (%p1114_p8) target bundleno = 407 (0x197), region = 28 }
  0x35   : > { %833 = dma.hbm_to_vmem [thread:$0]  (!%p1167_p2), %s172_s24, 16384, %s174_s29, %s160_s30, %s1392_s4, %s1392_s4, %s1039_s28  }
  0x39   : > { %1002 = dma.done.wait (%p1094_p1), [#allocation3], 2048  }
  0x3a   : > { %1004 = vsyncadd (%p1094_p1), [#allocation3], 4294965248  ;;  %s1185_s27 = sand.u32 1, %s1019_s10   ;;  %p1393_p10 = scmp.ne.s32.totalorder %s1385_s19, 0 }
  0x3b   : > { %s810_s7 = sshll.u32 %s1185_s27, 10  ;;  %s192_s8 = scalar_lea.sflag [#allocation6], %s1185_s27 }
  0x3c   : > { %s1189_s22 = scalar_lea.vmem [#allocation5], %s810_s7 }
  0x3d   : > { %1006 = dma.done.wait (%p1393_p10), %s192_s8, 16384  }
  0x3e   : > { %1008 = vsyncadd (%p1393_p10), %s192_s8, 4294950912  ;;  %v366_v0 = vld [vmem:[%s1189_s22 + $0x3c8] sm:$0xff]  ;;  %v368_v1 = vld [vmem:[%s1189_s22 + $0x3d8] sm:$0xff]  ;;  %s811_s17 = sshll.u32 %s1185_s27, 4  ;;  %s813_s19 = sshll.u32 %s1027_s12, 7 }
  0x3f   : > { %v365_v2 = vld [vmem:[%s1189_s22 + $0x3c0] sm:$0xff]  ;;  %373 = vmatprep.subr.mxu0 %v366_v0  ;;  %448 = vmatprep.subr.mxu1 %v368_v1  ;;  %v367_v3 = vld [vmem:[%s1189_s22 + $0x3d0] sm:$0xff]  ;;  %v358_v4 = vld [vmem:[%s1189_s22 + $0x388] sm:$0xff]  ;;  %s215_s21 = scalar_lea.vmem [#allocation7], %s811_s17  ;;  %s1328_s26 = scalar_lea.hbm %s1380_s2, %s813_s19 }
  0x40   : > { %v360_v5 = vld [vmem:[%s1189_s22 + $0x398] sm:$0xff]  ;;  %374 = vmatpush1.xpose.msra.mxu0 %v365_v2  ;;  %449 = vmatpush1.xpose.msra.mxu1 %v367_v3  ;;  %v357_v6 = vld [vmem:[%s1189_s22 + $0x380] sm:$0xff]  ;;  %v359_v7 = vld [vmem:[%s1189_s22 + $0x390] sm:$0xff]  ;;  %s693_s28 = sshll.u32 %s215_s21, 4  ;;  %s678_s29 = scalar_lea.sflag [#allocation4], %s1185_s27  ;;  %s1330_s28 = int_to_ptr.vmem [resolvable:$true] %s693_s28 }
  0x41   : > { %375 = vmatprep.subr.mxu0 %v358_v4  ;;  %450 = vmatprep.subr.mxu1 %v360_v5  ;;  %v350_v8 = vld [vmem:[%s1189_s22 + $0x348] sm:$0xff]  ;;  %v352_v9 = vld [vmem:[%s1189_s22 + $0x358] sm:$0xff]  ;;  %v349_v10 = vld [vmem:[%s1189_s22 + $0x340] sm:$0xff]  ;;  %s951_s12 = scalar_lea.vmem %s1330_s28, 256  ;;  %s1041_s18 = smov [#allocation7]  }
  0x42   : > { %v351_v11 = vld [vmem:[%s1189_s22 + $0x350] sm:$0xff]  ;;  %v342_v12 = vld [vmem:[%s1189_s22 + $0x308] sm:$0xff]  ;;  %v344_v13 = vld [vmem:[%s1189_s22 + $0x318] sm:$0xff]  ;;  %p952_p1 = scmp.ne.s32.totalorder %s1330_s28, %s951_s12  ;;  %s955_s30 = sshll.u32 %s1041_s18, 4  ;;  %s956_s30 = int_to_ptr.vmem [resolvable:$false] %s955_s30 }
  0x43   : > { %v341_v14 = vld [vmem:[%s1189_s22 + $0x300] sm:$0xff]  ;;  %v343_v15 = vld [vmem:[%s1189_s22 + $0x310] sm:$0xff]  ;;  %v334_v16 = vld [vmem:[%s1189_s22 + $0x2c8] sm:$0xff]  ;;  %s957_s6 = scalar_lea.vmem %s956_s30, 512  ;;  %p958_p0 = scmp.lt.s32.totalorder %s1330_s28, %s956_s30 }
  0x44   : > { %376 = vmatpush1.xpose.msra.mxu0 %v357_v6  ;;  %451 = vmatpush1.xpose.msra.mxu1 %v359_v7  ;;  %v336_v17 = vld [vmem:[%s1189_s22 + $0x2d8] sm:$0xff]  ;;  %v333_v18 = vld [vmem:[%s1189_s22 + $0x2c0] sm:$0xff]  ;;  %v335_v19 = vld [vmem:[%s1189_s22 + $0x2d0] sm:$0xff]  ;;  %p953_p8 = pnand %p952_p1, %p1150_p13  ;;  %p959_p2 = scmp.lt.s32.totalorder %s957_s6, %s951_s12 }
  0x45   : > { %377 = vmatprep.subr.mxu0 %v350_v8  ;;  %452 = vmatprep.subr.mxu1 %v352_v9  ;;  %v326_v20 = vld [vmem:[%s1189_s22 + $0x288] sm:$0xff]  ;;  %v328_v21 = vld [vmem:[%s1189_s22 + $0x298] sm:$0xff]  ;;  %v325_v22 = vld [vmem:[%s1189_s22 + $0x280] sm:$0xff] }
  0x46   : > { %v327_v23 = vld [vmem:[%s1189_s22 + $0x290] sm:$0xff]  ;;  %v318_v24 = vld [vmem:[%s1189_s22 + $0x248] sm:$0xff]  ;;  %v320_v25 = vld [vmem:[%s1189_s22 + $0x258] sm:$0xff]  ;;  %p954_p12 = pneg %p953_p8  ;;  %p960_p3 = por %p959_p2, %p958_p0 }
  0x47   : > { %v230_v26 = vld [vmem:[#allocation2 + $0x8] sm:$0xff]  ;;  %v232_v27 = vld [vmem:[#allocation2 + $0x18] sm:$0xff]  ;;  %v317_v28 = vld [vmem:[%s1189_s22 + $0x240] sm:$0xff] }
  0x48   : > { %378 = vmatpush1.xpose.msra.mxu0 %v349_v10  ;;  %453 = vmatpush1.xpose.msra.mxu1 %v351_v11  ;;  %v319_v29 = vld [vmem:[%s1189_s22 + $0x250] sm:$0xff]  ;;  %v310_v30 = vld [vmem:[%s1189_s22 + $0x208] sm:$0xff]  ;;  %v312_v31 = vld [vmem:[%s1189_s22 + $0x218] sm:$0xff]  ;;  %p961_p5 = pnand %p960_p3, %p954_p12 }
  0x49   : > { %379 = vmatprep.subr.mxu0 %v342_v12  ;;  %454 = vmatprep.subr.mxu1 %v344_v13  ;;  %v309_v32 = vld [vmem:[%s1189_s22 + $0x200] sm:$0xff]  ;;  %v311_v33 = vld [vmem:[%s1189_s22 + $0x210] sm:$0xff]  ;;  %v302_v34 = vld [vmem:[%s1189_s22 + $0x1c8] sm:$0xff] }
  0x4a   : > { %437 = vmatprep.mubr.f32.mxu0 %v230_v26  ;;  %512 = vmatprep.mubr.f32.mxu1 %v232_v27  ;;  %v304_v35 = vld [vmem:[%s1189_s22 + $0x1d8] sm:$0xff]  ;;  %v301_v36 = vld [vmem:[%s1189_s22 + $0x1c0] sm:$0xff]  ;;  %v303_v37 = vld [vmem:[%s1189_s22 + $0x1d0] sm:$0xff] }
  0x4b   : > { %v294_v38 = vld [vmem:[%s1189_s22 + $0x188] sm:$0xff]  ;;  %v296_v39 = vld [vmem:[%s1189_s22 + $0x198] sm:$0xff]  ;;  %v293_v40 = vld [vmem:[%s1189_s22 + $0x180] sm:$0xff] }
  0x4c   : > { %380 = vmatpush1.xpose.msra.mxu0 %v341_v14  ;;  %455 = vmatpush1.xpose.msra.mxu1 %v343_v15  ;;  %v295_v41 = vld [vmem:[%s1189_s22 + $0x190] sm:$0xff]  ;;  %v286_v42 = vld [vmem:[%s1189_s22 + $0x148] sm:$0xff]  ;;  %v288_v43 = vld [vmem:[%s1189_s22 + $0x158] sm:$0xff] }
  0x4d   : > { %381 = vmatprep.subr.mxu0 %v334_v16  ;;  %456 = vmatprep.subr.mxu1 %v336_v17  ;;  %v285_v44 = vld [vmem:[%s1189_s22 + $0x140] sm:$0xff]  ;;  %v287_v45 = vld [vmem:[%s1189_s22 + $0x150] sm:$0xff]  ;;  %v278_v46 = vld [vmem:[%s1189_s22 + $0x108] sm:$0xff] }
  0x4e   : > { %v280_v47 = vld [vmem:[%s1189_s22 + $0x118] sm:$0xff]  ;;  %v277_v48 = vld [vmem:[%s1189_s22 + $0x100] sm:$0xff]  ;;  %v279_v49 = vld [vmem:[%s1189_s22 + $0x110] sm:$0xff] }
  0x4f   : > { %v270_v50 = vld [vmem:[%s1189_s22 + $0xc8] sm:$0xff]  ;;  %v272_v51 = vld [vmem:[%s1189_s22 + $0xd8] sm:$0xff]  ;;  %v269_v52 = vld [vmem:[%s1189_s22 + $0xc0] sm:$0xff] }
  0x50   : > { %382 = vmatpush1.xpose.msra.mxu0 %v333_v18  ;;  %457 = vmatpush1.xpose.msra.mxu1 %v335_v19  ;;  %v271_v53 = vld [vmem:[%s1189_s22 + $0xd0] sm:$0xff]  ;;  %v262_v54 = vld [vmem:[%s1189_s22 + $0x88] sm:$0xff]  ;;  %v264_v55 = vld [vmem:[%s1189_s22 + $0x98] sm:$0xff] }
  0x51   : > { %383 = vmatprep.subr.mxu0 %v326_v20  ;;  %458 = vmatprep.subr.mxu1 %v328_v21  ;;  %v261_v56 = vld [vmem:[%s1189_s22 + $0x80] sm:$0xff]  ;;  %v263_v57 = vld [vmem:[%s1189_s22 + $0x90] sm:$0xff]  ;;  %v254_v58 = vld [vmem:[%s1189_s22 + $0x48] sm:$0xff] }
  0x52   : > { %v256_v59 = vld [vmem:[%s1189_s22 + $0x58] sm:$0xff]  ;;  %v253_v60 = vld [vmem:[%s1189_s22 + $0x40] sm:$0xff]  ;;  %v255_v61 = vld [vmem:[%s1189_s22 + $0x50] sm:$0xff] }
  0x53   : > { %v246_v62 = vld [vmem:[%s1189_s22 + $0x8] sm:$0xff]  ;;  %v248_v63 = vld [vmem:[%s1189_s22 + $0x18] sm:$0xff]  ;;  %v245_v0 = vld [vmem:[%s1189_s22] sm:$0xff] }
  0x54   : > { %384 = vmatpush1.xpose.msra.mxu0 %v325_v22  ;;  %459 = vmatpush1.xpose.msra.mxu1 %v327_v23  ;;  %v247_v1 = vld [vmem:[%s1189_s22 + $0x10] sm:$0xff]  ;;  %v370_v2 = vld [vmem:[%s1189_s22 + $0x3e8] sm:$0xff]  ;;  %v372_v3 = vld [vmem:[%s1189_s22 + $0x3f8] sm:$0xff] }
  0x55   : > { %385 = vmatprep.subr.mxu0 %v318_v24  ;;  %460 = vmatprep.subr.mxu1 %v320_v25  ;;  %v229_v4 = vld [vmem:[#allocation2] sm:$0xff]  ;;  %v231_v5 = vld [vmem:[#allocation2 + $0x10] sm:$0xff]  ;;  %v362_v8 = vld [vmem:[%s1189_s22 + $0x3a8] sm:$0xff] }
  0x56   : > { %v369_v6 = vld [vmem:[%s1189_s22 + $0x3e0] sm:$0xff]  ;;  %v371_v7 = vld [vmem:[%s1189_s22 + $0x3f0] sm:$0xff]  ;;  %v364_v9 = vld [vmem:[%s1189_s22 + $0x3b8] sm:$0xff] }
  0x57   : > { %v238_v10 = vld [vmem:[#allocation2 + $0x48] sm:$0xff]  ;;  %v240_v11 = vld [vmem:[#allocation2 + $0x58] sm:$0xff]  ;;  %v237_v12 = vld [vmem:[#allocation2 + $0x40] sm:$0xff] }
  0x58   : > { %386 = vmatpush1.xpose.msra.mxu0 %v317_v28  ;;  %461 = vmatpush1.xpose.msra.mxu1 %v319_v29  ;;  %v239_v13 = vld [vmem:[#allocation2 + $0x50] sm:$0xff]  ;;  %v361_v14 = vld [vmem:[%s1189_s22 + $0x3a0] sm:$0xff]  ;;  %v354_v16 = vld [vmem:[%s1189_s22 + $0x368] sm:$0xff] }
  0x59   : > { %387 = vmatprep.subr.mxu0 %v310_v30  ;;  %462 = vmatprep.subr.mxu1 %v312_v31  ;;  %v363_v15 = vld [vmem:[%s1189_s22 + $0x3b0] sm:$0xff]  ;;  %v356_v17 = vld [vmem:[%s1189_s22 + $0x378] sm:$0xff]  ;;  %v234_v18 = vld [vmem:[#allocation2 + $0x28] sm:$0xff] }
  0x5a   : > { %v236_v19 = vld [vmem:[#allocation2 + $0x38] sm:$0xff]  ;;  %v353_v20 = vld [vmem:[%s1189_s22 + $0x360] sm:$0xff]  ;;  %v355_v21 = vld [vmem:[%s1189_s22 + $0x370] sm:$0xff] }
  0x5b   : > { %v346_v22 = vld [vmem:[%s1189_s22 + $0x328] sm:$0xff]  ;;  %v348_v23 = vld [vmem:[%s1189_s22 + $0x338] sm:$0xff]  ;;  %v345_v24 = vld [vmem:[%s1189_s22 + $0x320] sm:$0xff] }
  0x5c   : > { %388 = vmatpush1.xpose.msra.mxu0 %v309_v32  ;;  %463 = vmatpush1.xpose.msra.mxu1 %v311_v33  ;;  %v347_v25 = vld [vmem:[%s1189_s22 + $0x330] sm:$0xff]  ;;  %v338_v26 = vld [vmem:[%s1189_s22 + $0x2e8] sm:$0xff]  ;;  %v340_v27 = vld [vmem:[%s1189_s22 + $0x2f8] sm:$0xff] }
  0x5d   : > { %389 = vmatprep.subr.mxu0 %v302_v34  ;;  %464 = vmatprep.subr.mxu1 %v304_v35  ;;  %v337_v28 = vld [vmem:[%s1189_s22 + $0x2e0] sm:$0xff]  ;;  %v339_v29 = vld [vmem:[%s1189_s22 + $0x2f0] sm:$0xff]  ;;  %v330_v30 = vld [vmem:[%s1189_s22 + $0x2a8] sm:$0xff] }
  0x5e   : > { %v332_v31 = vld [vmem:[%s1189_s22 + $0x2b8] sm:$0xff]  ;;  %v329_v32 = vld [vmem:[%s1189_s22 + $0x2a0] sm:$0xff]  ;;  %v331_v33 = vld [vmem:[%s1189_s22 + $0x2b0] sm:$0xff] }
  0x5f   : > { %v322_v34 = vld [vmem:[%s1189_s22 + $0x268] sm:$0xff]  ;;  %v324_v35 = vld [vmem:[%s1189_s22 + $0x278] sm:$0xff] }
  0x60   : > { %390 = vmatpush1.xpose.msra.mxu0 %v301_v36  ;;  %465 = vmatpush1.xpose.msra.mxu1 %v303_v37  ;;  %v321_v36 = vld [vmem:[%s1189_s22 + $0x260] sm:$0xff]  ;;  %v323_v37 = vld [vmem:[%s1189_s22 + $0x270] sm:$0xff] }
  0x61   : > { %391 = vmatprep.subr.mxu0 %v294_v38  ;;  %466 = vmatprep.subr.mxu1 %v296_v39  ;;  %v314_v38 = vld [vmem:[%s1189_s22 + $0x228] sm:$0xff]  ;;  %v316_v39 = vld [vmem:[%s1189_s22 + $0x238] sm:$0xff] }
  0x64   : > { %392 = vmatpush1.xpose.msra.mxu0 %v293_v40  ;;  %467 = vmatpush1.xpose.msra.mxu1 %v295_v41  ;;  %v313_v40 = vld [vmem:[%s1189_s22 + $0x220] sm:$0xff]  ;;  %v315_v41 = vld [vmem:[%s1189_s22 + $0x230] sm:$0xff] }
  0x65   : > { %393 = vmatprep.subr.mxu0 %v286_v42  ;;  %468 = vmatprep.subr.mxu1 %v288_v43  ;;  %v306_v42 = vld [vmem:[%s1189_s22 + $0x1e8] sm:$0xff]  ;;  %v308_v43 = vld [vmem:[%s1189_s22 + $0x1f8] sm:$0xff] }
  0x68   : > { %394 = vmatpush1.xpose.msra.mxu0 %v285_v44  ;;  %469 = vmatpush1.xpose.msra.mxu1 %v287_v45  ;;  %v305_v44 = vld [vmem:[%s1189_s22 + $0x1e0] sm:$0xff]  ;;  %v307_v45 = vld [vmem:[%s1189_s22 + $0x1f0] sm:$0xff] }
  0x69   : > { %395 = vmatprep.subr.mxu0 %v278_v46  ;;  %470 = vmatprep.subr.mxu1 %v280_v47  ;;  %v298_v46 = vld [vmem:[%s1189_s22 + $0x1a8] sm:$0xff]  ;;  %v300_v47 = vld [vmem:[%s1189_s22 + $0x1b8] sm:$0xff] }
  0x6c   : > { %396 = vmatpush1.xpose.msra.mxu0 %v277_v48  ;;  %471 = vmatpush1.xpose.msra.mxu1 %v279_v49  ;;  %v297_v48 = vld [vmem:[%s1189_s22 + $0x1a0] sm:$0xff]  ;;  %v299_v49 = vld [vmem:[%s1189_s22 + $0x1b0] sm:$0xff] }
  0x6d   : > { %397 = vmatprep.subr.mxu0 %v270_v50  ;;  %472 = vmatprep.subr.mxu1 %v272_v51  ;;  %v290_v50 = vld [vmem:[%s1189_s22 + $0x168] sm:$0xff]  ;;  %v292_v51 = vld [vmem:[%s1189_s22 + $0x178] sm:$0xff] }
  0x70   : > { %398 = vmatpush1.xpose.msra.mxu0 %v269_v52  ;;  %473 = vmatpush1.xpose.msra.mxu1 %v271_v53  ;;  %v289_v52 = vld [vmem:[%s1189_s22 + $0x160] sm:$0xff]  ;;  %v291_v53 = vld [vmem:[%s1189_s22 + $0x170] sm:$0xff] }
  0x71   : > { %399 = vmatprep.subr.mxu0 %v262_v54  ;;  %474 = vmatprep.subr.mxu1 %v264_v55  ;;  %v282_v54 = vld [vmem:[%s1189_s22 + $0x128] sm:$0xff]  ;;  %v284_v55 = vld [vmem:[%s1189_s22 + $0x138] sm:$0xff] }
  0x74   : > { %400 = vmatpush1.xpose.msra.mxu0 %v261_v56  ;;  %475 = vmatpush1.xpose.msra.mxu1 %v263_v57  ;;  %v281_v56 = vld [vmem:[%s1189_s22 + $0x120] sm:$0xff]  ;;  %v283_v57 = vld [vmem:[%s1189_s22 + $0x130] sm:$0xff] }
  0x75   : > { %401 = vmatprep.subr.mxu0 %v254_v58  ;;  %476 = vmatprep.subr.mxu1 %v256_v59  ;;  %v274_v58 = vld [vmem:[%s1189_s22 + $0xe8] sm:$0xff]  ;;  %v276_v59 = vld [vmem:[%s1189_s22 + $0xf8] sm:$0xff] }
  0x78   : > { %402 = vmatpush1.xpose.msra.mxu0 %v253_v60  ;;  %477 = vmatpush1.xpose.msra.mxu1 %v255_v61  ;;  %v273_v60 = vld [vmem:[%s1189_s22 + $0xe0] sm:$0xff]  ;;  %v275_v61 = vld [vmem:[%s1189_s22 + $0xf0] sm:$0xff] }
  0x79   : > { %403 = vmatprep.subr.mxu0 %v246_v62  ;;  %478 = vmatprep.subr.mxu1 %v248_v63  ;;  %v266_v62 = vld [vmem:[%s1189_s22 + $0xa8] sm:$0xff]  ;;  %v268_v63 = vld [vmem:[%s1189_s22 + $0xb8] sm:$0xff] }
  0x7c   : > { %404 = vmatpush1.xpose.msra.mxu0 %v245_v0  ;;  %479 = vmatpush1.xpose.msra.mxu1 %v247_v1  ;;  %v265_v0 = vld [vmem:[%s1189_s22 + $0xa0] sm:$0xff]  ;;  %v267_v1 = vld [vmem:[%s1189_s22 + $0xb0] sm:$0xff] }
  0x7d   : > { %523 = vmatprep.subr.mxu0 %v370_v2  ;;  %598 = vmatprep.subr.mxu1 %v372_v3  ;;  %v258_v2 = vld [vmem:[%s1189_s22 + $0x68] sm:$0xff]  ;;  %v260_v3 = vld [vmem:[%s1189_s22 + $0x78] sm:$0xff] }
  0x7f   : > { %438 = vmatmul.mubr.f32.vlgmr.msra.gmra.mxu0 %v229_v4  ;;  %513 = vmatmul.mubr.f32.vlgmr.msra.gmra.mxu1 %v231_v5  ;;  %v257_v4 = vld [vmem:[%s1189_s22 + $0x60] sm:$0xff]  ;;  %v259_v5 = vld [vmem:[%s1189_s22 + $0x70] sm:$0xff] }
  0x80   : > { %524 = vmatpush1.xpose.msra.mxu0 %v369_v6  ;;  %599 = vmatpush1.xpose.msra.mxu1 %v371_v7  ;;  %v250_v6 = vld [vmem:[%s1189_s22 + $0x28] sm:$0xff]  ;;  %v252_v7 = vld [vmem:[%s1189_s22 + $0x38] sm:$0xff] }
  0x81   : > { %525 = vmatprep.subr.mxu0 %v362_v8  ;;  %600 = vmatprep.subr.mxu1 %v364_v9  ;;  %v249_v8 = vld [vmem:[%s1189_s22 + $0x20] sm:$0xff]  ;;  %v251_v9 = vld [vmem:[%s1189_s22 + $0x30] sm:$0xff] }
  0x82   : > { %442 = vmatprep.mubr.f32.mxu0 %v238_v10  ;;  %517 = vmatprep.mubr.f32.mxu1 %v240_v11  ;;  %v233_v10 = vld [vmem:[#allocation2 + $0x20] sm:$0xff]  ;;  %v235_v11 = vld [vmem:[#allocation2 + $0x30] sm:$0xff] }
  0x83   : > { %443 = vmatmul.mubr.f32.gmra.mxu0 %v237_v12  ;;  %518 = vmatmul.mubr.f32.gmra.mxu1 %v239_v13  ;;  %v242_v12 = vld [vmem:[#allocation2 + $0x68] sm:$0xff]  ;;  %v244_v13 = vld [vmem:[#allocation2 + $0x78] sm:$0xff] }
  0x84   : > { %526 = vmatpush1.xpose.msra.mxu0 %v361_v14  ;;  %601 = vmatpush1.xpose.msra.mxu1 %v363_v15  ;;  %v241_v14 = vld [vmem:[#allocation2 + $0x60] sm:$0xff]  ;;  %v243_v15 = vld [vmem:[#allocation2 + $0x70] sm:$0xff] }
  0x85   : > { %527 = vmatprep.subr.mxu0 %v354_v16  ;;  %602 = vmatprep.subr.mxu1 %v356_v17 }
  0x86   : > { %587 = vmatprep.mubr.f32.mxu0 %v234_v18  ;;  %662 = vmatprep.mubr.f32.mxu1 %v236_v19 }
  0x88   : > { %528 = vmatpush1.xpose.msra.mxu0 %v353_v20  ;;  %603 = vmatpush1.xpose.msra.mxu1 %v355_v21 }
  0x89   : > { %529 = vmatprep.subr.mxu0 %v346_v22  ;;  %604 = vmatprep.subr.mxu1 %v348_v23 }
  0x8c   : > { %530 = vmatpush1.xpose.msra.mxu0 %v345_v24  ;;  %605 = vmatpush1.xpose.msra.mxu1 %v347_v25 }
  0x8d   : > { %531 = vmatprep.subr.mxu0 %v338_v26  ;;  %606 = vmatprep.subr.mxu1 %v340_v27 }
  0x90   : > { %532 = vmatpush1.xpose.msra.mxu0 %v337_v28  ;;  %607 = vmatpush1.xpose.msra.mxu1 %v339_v29 }
  0x91   : > { %533 = vmatprep.subr.mxu0 %v330_v30  ;;  %608 = vmatprep.subr.mxu1 %v332_v31 }
  0x94   : > { %534 = vmatpush1.xpose.msra.mxu0 %v329_v32  ;;  %609 = vmatpush1.xpose.msra.mxu1 %v331_v33 }
  0x95   : > { %535 = vmatprep.subr.mxu0 %v322_v34  ;;  %610 = vmatprep.subr.mxu1 %v324_v35 }
  0x98   : > { %536 = vmatpush1.xpose.msra.mxu0 %v321_v36  ;;  %611 = vmatpush1.xpose.msra.mxu1 %v323_v37 }
  0x99   : > { %537 = vmatprep.subr.mxu0 %v314_v38  ;;  %612 = vmatprep.subr.mxu1 %v316_v39 }
  0x9c   : > { %538 = vmatpush1.xpose.msra.mxu0 %v313_v40  ;;  %613 = vmatpush1.xpose.msra.mxu1 %v315_v41 }
  0x9d   : > { %539 = vmatprep.subr.mxu0 %v306_v42  ;;  %614 = vmatprep.subr.mxu1 %v308_v43 }
  0xa0   : > { %540 = vmatpush1.xpose.msra.mxu0 %v305_v44  ;;  %615 = vmatpush1.xpose.msra.mxu1 %v307_v45 }
  0xa1   : > { %541 = vmatprep.subr.mxu0 %v298_v46  ;;  %616 = vmatprep.subr.mxu1 %v300_v47 }
  0xa4   : > { %542 = vmatpush1.xpose.msra.mxu0 %v297_v48  ;;  %617 = vmatpush1.xpose.msra.mxu1 %v299_v49 }
  0xa5   : > { %543 = vmatprep.subr.mxu0 %v290_v50  ;;  %618 = vmatprep.subr.mxu1 %v292_v51 }
  0xa8   : > { %544 = vmatpush1.xpose.msra.mxu0 %v289_v52  ;;  %619 = vmatpush1.xpose.msra.mxu1 %v291_v53 }
  0xa9   : > { %545 = vmatprep.subr.mxu0 %v282_v54  ;;  %620 = vmatprep.subr.mxu1 %v284_v55 }
  0xac   : > { %546 = vmatpush1.xpose.msra.mxu0 %v281_v56  ;;  %621 = vmatpush1.xpose.msra.mxu1 %v283_v57 }
  0xad   : > { %547 = vmatprep.subr.mxu0 %v274_v58  ;;  %622 = vmatprep.subr.mxu1 %v276_v59 }
  0xb0   : > { %548 = vmatpush1.xpose.msra.mxu0 %v273_v60  ;;  %623 = vmatpush1.xpose.msra.mxu1 %v275_v61 }
  0xb1   : > { %549 = vmatprep.subr.mxu0 %v266_v62  ;;  %624 = vmatprep.subr.mxu1 %v268_v63 }
  0xb4   : > { %550 = vmatpush1.xpose.msra.mxu0 %v265_v0  ;;  %625 = vmatpush1.xpose.msra.mxu1 %v267_v1 }
  0xb5   : > { %551 = vmatprep.subr.mxu0 %v258_v2  ;;  %626 = vmatprep.subr.mxu1 %v260_v3 }
  0xb8   : > { %552 = vmatpush1.xpose.msra.mxu0 %v257_v4  ;;  %627 = vmatpush1.xpose.msra.mxu1 %v259_v5 }
  0xb9   : > { %553 = vmatprep.subr.mxu0 %v250_v6  ;;  %628 = vmatprep.subr.mxu1 %v252_v7 }
  0xbc   : > { %554 = vmatpush1.xpose.msra.mxu0 %v249_v8  ;;  %629 = vmatpush1.xpose.msra.mxu1 %v251_v9 }
  0xbf   : > { %588 = vmatmul.mubr.f32.vlgmr.msra.gmra.mxu0 %v233_v10  ;;  %663 = vmatmul.mubr.f32.vlgmr.msra.gmra.mxu1 %v235_v11 }
  0xc0   : > { %592 = vmatprep.mubr.f32.mxu0 %v242_v12  ;;  %667 = vmatprep.mubr.f32.mxu1 %v244_v13 }
  0xc3   : > { %593 = vmatmul.mubr.f32.gmra.mxu0 %v241_v14  ;;  %668 = vmatmul.mubr.f32.gmra.mxu1 %v243_v15 }
 0x13f   : > { %v439_v16 = vpop.f32.mrf.mxu0  ;;  %v514_v17 = vpop.f32.mrf.mxu1 }
 0x140   : > { %v515_v24 = vadd.f32 %v514_v17, %v439_v16 }
 0x141   : > { %v441_v18 = vpop.f32.mrf.mxu0  ;;  %v516_v19 = vpop.f32.mrf.mxu1 }
 0x143   : > { %v444_v20 = vpop.f32.mrf.mxu0  ;;  %v519_v21 = vpop.f32.mrf.mxu1 }
 0x144   : > { %v520_v30 = vadd.f32 %v519_v21, %v444_v20 }
 0x145   : > { %v446_v22 = vpop.f32.mrf.mxu0  ;;  %v521_v23 = vpop.f32.mrf.mxu1 }
 0x17f   : > { %v589_v25 = vpop.f32.mrf.mxu0  ;;  %v664_v26 = vpop.f32.mrf.mxu1 }
 0x180   : > { %v590_v27 = vadd.f32 %v589_v25, %v515_v24 }
 0x181   : > { %v591_v28 = vpop.f32.mrf.mxu0  ;;  %v666_v29 = vpop.f32.mrf.mxu1 }
 0x182   : > { %v665_v31 = vadd.f32 %v664_v26, %v590_v27 }
 0x183   : > { %v594_v32 = vpop.f32.mrf.mxu0  ;;  %v669_v33 = vpop.f32.mrf.mxu1 }
 0x184   : > { %v595_v34 = vadd.f32 %v594_v32, %v520_v30  ;;  %675 = vst [vmem:[%s215_s21] sm:$0xff] %v665_v31 }
 0x185   : > { %v596_v35 = vpop.f32.mrf.mxu0  ;;  %v671_v36 = vpop.f32.mrf.mxu1 }
 0x186   : > { %v670_v37 = vadd.f32 %v669_v33, %v595_v34 }
 0x188   : > { %676 = vst [vmem:[%s215_s21 + $0x8] sm:$0xff] %v670_v37 }
 0x189   : > { %964 = shalt.err (!%p961_p5)
}
 0x18a   : > { %s965_s3 = scalar_lea.hbm %s1328_s26, 256  ;;  %s969_s7 = scalar_lea.hbm %s1380_s2, 512 }
 0x18b   : > { %p966_p7 = scmp.ne.s32.totalorder %s1328_s26, %s965_s3  ;;  %p970_p9 = scmp.lt.s32.totalorder %s1328_s26, %s1380_s2 }
 0x18c   : > { %p971_p11 = scmp.lt.s32.totalorder %s969_s7, %s965_s3 }
 0x18d   : > { %p967_p4 = pnand %p966_p7, %p1150_p13 }
 0x18e   : > { %p972_p10 = por %p971_p11, %p970_p9 }
 0x18f   : > { %p968_p6 = pneg %p967_p4 }
 0x191   : > { %p973_p1 = pnand %p972_p10, %p968_p6 }
 0x193   : > { %976 = shalt.err (!%p973_p1)
}
 0x194   : > { %s1042_s17 = smov 128   ;;  %s1043_s19 = smov 256  }
 0x195   : > { %s1044_s21 = smov 8  }
 0x196   : > { %824 = dma.vmem_to_hbm [thread:$0]  (%p1150_p13), %s1330_s28, 256, %s1328_s26, %s678_s29, %s1042_s17, %s1043_s19, %s1044_s21  }
 0x197 PF: > { %s708_s23 = sand.u32 1, %s1015_s9   ;;  %p1394_p8 = scmp.ne.s32.totalorder %s1386_s20, 0 }
 0x198   : > { %p1395_p12 = scmp.ge.s32.totalorder %s1035_s14, 2  ;;  %s709_s24 = scalar_lea.sflag [#allocation4], %s708_s23 }
 0x19a   : > { %p835_p0 = pnand %p1395_p12, %p1394_p8 }
 0x19c   : > { %p836_p2 = pneg %p835_p0 }
 0x19e   : > { %1010 = dma.done.wait (%p836_p2), %s709_s24, 256  }
 0x19f   : > { %1012 = vsyncadd (%p836_p2), %s709_s24, 4294967040  ;;  %s19_s14 = sadd.s32 1, %s1035_s14   ;;  %s1396_s9 = smov %s1019_s10 }
 0x1a0   : > { %p16_p3 = scmp.ge.s32.totalorder %s19_s14, 4   ;;  %s1397_s10 = smov %s1023_s11 }
 0x1a1   : > { %s1398_s11 = smov %s1159_s15  ;;  %s1399_s12 = smov %s1031_s13 }
 0x1a2   : > { %s1400_s13 = smov %s1402_s25  ;;  %18 = sbr.rel (!%p16_p3) target bundleno = 7 (0x7), region = 83 }
 0x1a7   :  { %714 = vsyncpa [#allocation3], 1 }
 0x1a8   :  { %716 = vsyncpa [#allocation3 + $0x1], 1 }
 0x1a9   :  { %717 = vsyncpa [#allocation6], 1 }
 0x1aa   :  { %719 = vsyncpa [#allocation6 + $0x1], 1 }
 0x1ab   :  { %720 = vsyncpa [#allocation4], 1 }
 0x1ac   :  { %722 = vsyncpa [#allocation4 + $0x1], 1 }

</bundles_post_ra>
